<compile_context>
chip_gen: v5e
topology: v5e:2x2
jax: 0.10.0
libtpu: 0.0.40
codegen_flags: <defaults>
</compile_context>

<pallas_src>
import functools

import jax
import jax.numpy as jnp
from jax.experimental import pallas as pl
from jax.experimental.pallas import tpu as pltpu


def _round_up(x, m):
    return (x + m - 1) // m * m


def _ce_label_smooth_kernel(inputs_ref, targets_ref, out_ref, acc_ref, *,
                            epsilon, num_classes, total_batch):
    # inputs_ref: (TB, C) logits (any float dtype), targets_ref: (TB, 1) int32
    i = pl.program_id(0)

    @pl.when(i == 0)
    def _init():
        acc_ref[...] = jnp.zeros_like(acc_ref)

    x = inputs_ref[...].astype(jnp.float32)            # cast in-kernel (bf16 -> f32)
    t = targets_ref[...]                                # (TB, 1) int32
    TB, C = x.shape

    # Validity mask for padded batch rows (global row index >= total_batch -> 0).
    row = jax.lax.broadcasted_iota(jnp.int32, (TB, 1), 0) + i * TB
    valid = (row < total_batch).astype(jnp.float32)     # (TB, 1)

    # Numerically stable log-softmax pieces (never materialize full log_probs).
    m = jnp.max(x, axis=1, keepdims=True)                # (TB, 1)
    shifted = x - m                                      # (TB, C)
    lse = jnp.log(jnp.sum(jnp.exp(shifted), axis=1, keepdims=True))  # (TB, 1)

    # Gather shifted[t] via iota-compare (no one-hot matrix kept around).
    col = jax.lax.broadcasted_iota(jnp.int32, (TB, C), 1)
    tgt_shifted = jnp.sum(jnp.where(col == t, shifted, 0.0), axis=1, keepdims=True)

    tgt_logp = tgt_shifted - lse                                       # log_p[t]
    sum_logp = jnp.sum(shifted, axis=1, keepdims=True) - C * lse       # sum_j log_p[j]

    per_row = -((1.0 - epsilon) * tgt_logp + (epsilon / num_classes) * sum_logp)
    acc_ref[...] += jnp.sum(per_row * valid, axis=0, keepdims=True)    # (1, 1)

    @pl.when(i == pl.num_programs(0) - 1)
    def _finalize():
        out_ref[...] = acc_ref[...] * (1.0 / jnp.float32(total_batch))


def cross_entropy_label_smooth(inputs, targets, *, num_classes, epsilon=0.1,
                               block_batch=None, tile_bytes_budget=8 * 1024 * 1024):
    """inputs: (B, num_classes) float logits (f32 or bf16); targets: (B,) int labels.

    Returns scalar f32 loss matching
        (-smoothed_onehot * log_softmax(inputs)).mean(0).sum()
    """
    B, C = inputs.shape
    assert C == num_classes
    itemsize = jnp.dtype(inputs.dtype).itemsize

    # Pick a batch tile: multiple of 8 rows, tile bytes under budget (v7x-safe with
    # double buffering), but never bigger than the (8-rounded) batch itself.
    if block_batch is None:
        rows_fit = max(8, (tile_bytes_budget // max(C * itemsize, 1)) // 8 * 8)
        block_batch = min(_round_up(B, 8), rows_fit)
    TB = int(block_batch)
    assert TB % 8 == 0, "block_batch must be a multiple of 8"

    padded_B = _round_up(B, TB)
    grid = padded_B // TB

    x = inputs
    t = targets.astype(jnp.int32).reshape(B, 1)
    pad = padded_B - B
    if pad:
        x = jnp.pad(x, ((0, pad), (0, 0)))
        t = jnp.pad(t, ((0, pad), (0, 0)))

    kernel = functools.partial(
        _ce_label_smooth_kernel,
        epsilon=float(epsilon),
        num_classes=int(num_classes),
        total_batch=int(B),
    )

    out = pl.pallas_call(
        kernel,
        out_shape=jax.ShapeDtypeStruct((1, 1), jnp.float32),
        grid=(grid,),
        in_specs=[
            pl.BlockSpec((TB, C), lambda i: (i, 0)),   # logits tile (lane axis = classes)
            pl.BlockSpec((TB, 1), lambda i: (i, 0)),   # labels tile
        ],
        out_specs=pl.BlockSpec((1, 1), lambda i: (0, 0)),   # resident scalar output
        scratch_shapes=[pltpu.VMEM((1, 1), jnp.float32)],   # running loss accumulator
        compiler_params=pltpu.CompilerParams(
            dimension_semantics=("arbitrary",),             # batch axis is a reduction
            vmem_limit_bytes=32 * 1024 * 1024,
        ),
    )(x, t)
    return out[0, 0]


def _reference(inputs, targets, num_classes, epsilon=0.1):
    log_probs = jax.nn.log_softmax(inputs.astype(jnp.float32), axis=1)
    onehot = jax.nn.one_hot(targets, num_classes, dtype=jnp.float32)
    smoothed = (1.0 - epsilon) * onehot + epsilon / num_classes
    return (-smoothed * log_probs).mean(0).sum()


if __name__ == "__main__":
    batch, num_classes = 10, 128   # B not a multiple of the tile -> exercises masking
    key = jax.random.PRNGKey(0)
    k1, k2 = jax.random.split(key)
    inputs = jax.random.normal(k1, (batch, num_classes), dtype=jnp.float32)
    targets = jax.random.randint(k2, (batch,), 0, num_classes, dtype=jnp.int32)

    # f32 logits, tiled over the batch (grid of 2 with block_batch=8).
    loss = cross_entropy_label_smooth(
        inputs, targets, num_classes=num_classes, epsilon=0.1, block_batch=8)
    loss = jax.block_until_ready(loss)
    ref = _reference(inputs, targets, num_classes, epsilon=0.1)
    assert jnp.allclose(loss, ref, atol=5e-5, rtol=1e-5), (loss, ref)

    # bf16 logits path: half the HBM bytes; f32 cast happens inside the kernel.
    inputs_bf16 = inputs.astype(jnp.bfloat16)
    loss_bf16 = cross_entropy_label_smooth(
        inputs_bf16, targets, num_classes=num_classes, epsilon=0.1, block_batch=8)
    loss_bf16 = jax.block_until_ready(loss_bf16)
    ref_bf16 = _reference(inputs_bf16, targets, num_classes, epsilon=0.1)
    assert jnp.allclose(loss_bf16, ref_bf16, atol=1e-3, rtol=1e-3), (loss_bf16, ref_bf16)

    print("KERNEL_OK")
</pallas_src>

<mosaic_0001>
module attributes {stable_mosaic.version = 11 : i64} {
  func.func @_ce_label_smooth_kernel(%arg0: i32, %arg1: memref<8x128xf32, #tpu.memory_space<vmem>>, %arg2: memref<8x1xi32, #tpu.memory_space<vmem>>, %arg3: memref<1x1xf32, #tpu.memory_space<vmem>>, %arg4: memref<1x1xf32, #tpu.memory_space<vmem>>) attributes {dimension_semantics = [#tpu.dimension_semantics<arbitrary>], iteration_bounds = array<i64: 2>, scalar_prefetch = 0 : i64, scratch_operands = 1 : i64, tpu.core_type = #tpu.core_type<tc>, window_params = [{transform_indices = @transform_0, window_bounds = array<i64: 8, 128>}, {transform_indices = @transform_1, window_bounds = array<i64: 8, 1>}, {pipeline_mode = #tpu.pipeline_mode<synchronous>, transform_indices = @transform_2, window_bounds = array<i64: 1, 1>}]} {
    %c0_i32 = arith.constant 0 : i32
    %0 = arith.cmpi eq, %arg0, %c0_i32 : i32
    %1 = arith.extui %0 : i1 to i32
    %c0_i32_0 = arith.constant 0 : i32
    %2 = arith.cmpi ne, %1, %c0_i32_0 : i32
    scf.if %2 {
      %cst_18 = arith.constant 0.000000e+00 : f32
      %50 = vector.broadcast %cst_18 : f32 to vector<1x1xf32>
      %c0_19 = arith.constant 0 : index
      %c0_20 = arith.constant 0 : index
      %51 = vector.load %arg4[%c0_19, %c0_20] : memref<1x1xf32, #tpu.memory_space<vmem>>, vector<1x1xf32>
      tpu.vector_store %arg4[%c0_19, %c0_20], %50 {strides = array<i32>} : memref<1x1xf32, #tpu.memory_space<vmem>>, vector<1x1xf32>,
    } else {
    }
    %c0 = arith.constant 0 : index
    %c0_1 = arith.constant 0 : index
    %3 = vector.load %arg1[%c0, %c0_1] : memref<8x128xf32, #tpu.memory_space<vmem>>, vector<8x128xf32>
    %c0_2 = arith.constant 0 : index
    %c0_3 = arith.constant 0 : index
    %4 = vector.load %arg2[%c0_2, %c0_3] : memref<8x1xi32, #tpu.memory_space<vmem>>, vector<8x1xi32>
    %5 = tpu.iota {dimensions = array<i32: 0>} : vector<8x1xi32>
    %c8_i32 = arith.constant 8 : i32
    %6 = arith.muli %arg0, %c8_i32 : i32
    %7 = vector.broadcast %6 : i32 to vector<8x1xi32>
    %8 = arith.addi %5, %7 : vector<8x1xi32>
    %c10_i32 = arith.constant 10 : i32
    %9 = vector.broadcast %c10_i32 : i32 to vector<8x1xi32>
    %10 = arith.cmpi slt, %8, %9 : vector<8x1xi32>
    %11 = arith.extui %10 : vector<8x1xi1> to vector<8x1xi32>
    %12 = arith.sitofp %11 : vector<8x1xi32> to vector<8x1xf32>
    %cst = arith.constant dense<0xFF800000> : vector<8xf32>
    %13 = vector.multi_reduction <maximumf>, %3, %cst [1] : vector<8x128xf32> to vector<8xf32>
    %14 = vector.shape_cast %13 : vector<8xf32> to vector<8x1xf32>
    %15 = vector.broadcast %14 : vector<8x1xf32> to vector<8x128xf32>
    %16 = arith.subf %3, %15 : vector<8x128xf32>
    %17 = math.exp %16 : vector<8x128xf32>
    %cst_4 = arith.constant dense<0.000000e+00> : vector<8xf32>
    %18 = vector.multi_reduction <add>, %17, %cst_4 [1] : vector<8x128xf32> to vector<8xf32>
    %19 = vector.shape_cast %18 : vector<8xf32> to vector<8x1xf32>
    %20 = math.log %19 : vector<8x1xf32>
    %21 = tpu.iota {dimensions = array<i32: 1>} : vector<8x128xi32>
    %22 = vector.broadcast %4 : vector<8x1xi32> to vector<8x128xi32>
    %23 = arith.cmpi eq, %21, %22 : vector<8x128xi32>
    %cst_5 = arith.constant 0.000000e+00 : f32
    %24 = vector.broadcast %cst_5 : f32 to vector<8x128xf32>
    %25 = arith.select %23, %16, %24 : vector<8x128xi1>, vector<8x128xf32>
    %cst_6 = arith.constant dense<0.000000e+00> : vector<8xf32>
    %26 = vector.multi_reduction <add>, %25, %cst_6 [1] : vector<8x128xf32> to vector<8xf32>
    %27 = vector.shape_cast %26 : vector<8xf32> to vector<8x1xf32>
    %28 = arith.subf %27, %20 : vector<8x1xf32>
    %cst_7 = arith.constant dense<0.000000e+00> : vector<8xf32>
    %29 = vector.multi_reduction <add>, %16, %cst_7 [1] : vector<8x128xf32> to vector<8xf32>
    %30 = vector.shape_cast %29 : vector<8xf32> to vector<8x1xf32>
    %cst_8 = arith.constant 1.280000e+02 : f32
    %31 = vector.broadcast %cst_8 : f32 to vector<8x1xf32>
    %32 = arith.mulf %31, %20 : vector<8x1xf32>
    %33 = arith.subf %30, %32 : vector<8x1xf32>
    %cst_9 = arith.constant 0.899999976 : f32
    %34 = vector.broadcast %cst_9 : f32 to vector<8x1xf32>
    %35 = arith.mulf %34, %28 : vector<8x1xf32>
    %cst_10 = arith.constant 7.812500e-04 : f32
    %36 = vector.broadcast %cst_10 : f32 to vector<8x1xf32>
    %37 = arith.mulf %36, %33 : vector<8x1xf32>
    %38 = arith.addf %35, %37 : vector<8x1xf32>
    %cst_11 = arith.constant 0.000000e+00 : f32
    %39 = vector.broadcast %cst_11 : f32 to vector<8x1xf32>
    %40 = arith.subf %39, %38 : vector<8x1xf32>
    %c0_12 = arith.constant 0 : index
    %c0_13 = arith.constant 0 : index
    %41 = vector.load %arg4[%c0_12, %c0_13] : memref<1x1xf32, #tpu.memory_space<vmem>>, vector<1x1xf32>
    %42 = arith.mulf %40, %12 : vector<8x1xf32>
    %cst_14 = arith.constant dense<0.000000e+00> : vector<1xf32>
    %43 = vector.multi_reduction <add>, %42, %cst_14 [0] : vector<8x1xf32> to vector<1xf32>
    %44 = vector.shape_cast %43 : vector<1xf32> to vector<1x1xf32>
    %45 = arith.addf %41, %44 : vector<1x1xf32>
    %c0_15 = arith.constant 0 : index
    %c0_16 = arith.constant 0 : index
    %46 = vector.load %arg4[%c0_15, %c0_16] : memref<1x1xf32, #tpu.memory_space<vmem>>, vector<1x1xf32>
    tpu.vector_store %arg4[%c0_15, %c0_16], %45 {strides = array<i32>} : memref<1x1xf32, #tpu.memory_space<vmem>>, vector<1x1xf32>,
    %c1_i32 = arith.constant 1 : i32
    %47 = arith.cmpi eq, %arg0, %c1_i32 : i32
    %48 = arith.extui %47 : i1 to i32
    %c0_i32_17 = arith.constant 0 : i32
    %49 = arith.cmpi ne, %48, %c0_i32_17 : i32
    scf.if %49 {
      %c0_18 = arith.constant 0 : index
      %c0_19 = arith.constant 0 : index
      %50 = vector.load %arg4[%c0_18, %c0_19] : memref<1x1xf32, #tpu.memory_space<vmem>>, vector<1x1xf32>
      %cst_20 = arith.constant 1.000000e+00 : f32
      %cst_21 = arith.constant 1.000000e+01 : f32
      %51 = arith.divf %cst_20, %cst_21 : f32
      %52 = vector.broadcast %51 : f32 to vector<1x1xf32>
      %53 = arith.mulf %50, %52 : vector<1x1xf32>
      %c0_22 = arith.constant 0 : index
      %c0_23 = arith.constant 0 : index
      %54 = vector.load %arg3[%c0_22, %c0_23] : memref<1x1xf32, #tpu.memory_space<vmem>>, vector<1x1xf32>
      tpu.vector_store %arg3[%c0_22, %c0_23], %53 {strides = array<i32>} : memref<1x1xf32, #tpu.memory_space<vmem>>, vector<1x1xf32>,
    } else {
    }
    return
  }
  func.func @transform_0(%arg0: i32) -> (i32, i32) {
    %c0_i32 = arith.constant 0 : i32
    %c0_i32_0 = arith.constant 0 : i32
    return %arg0, %c0_i32 : i32, i32
  }
  func.func @transform_1(%arg0: i32) -> (i32, i32) {
    %c0_i32 = arith.constant 0 : i32
    %c0_i32_0 = arith.constant 0 : i32
    return %arg0, %c0_i32 : i32, i32
  }
  func.func @transform_2(%arg0: i32) -> (i32, i32) {
    %c0_i32 = arith.constant 0 : i32
    %c0_i32_0 = arith.constant 0 : i32
    %c0_i32_1 = arith.constant 0 : i32
    return %c0_i32, %c0_i32_0 : i32, i32
  }
}

</mosaic_0001>

<bundles_post_ra>
// kernel: tpu_custom_call.1
= control target key start
LH: loop header
LB: loop body
LE: loop exit
PB: predicated region body
PF: predicated region fallthrough
CT: control target
= control target key end

     0   :  { %7 = vsyncpa [#allocation4], 0  ;;  %s361_s9 = smov 0   ;;  %s389_s0 = inlined_call_operand.vmem [shape: f32[16,128], index: 0, kind: input, shape index: {}]   ;;  %s390_s1 = inlined_call_operand.vmem [shape: s32[16,1], index: 1, kind: input, shape index: {}]   ;;  %s391_s2 = inlined_call_operand.hbm [shape: f32[1,1], index: 2, kind: output, shape index: {}]  }
   0x1 LB: > { %s367_s10 = sadd.s32 4294967295, %s340_s9   ;;  %p268_p0 = scmp.ge.s32.totalorder %s340_s9, 1  ;;  %s340_s9 = sphi %s361_s9, %s13_s9  }
   0x2   : > { %p116_p1 = scmp.lt.s32.totalorder %s340_s9, 3 }
   0x4   : > { %p117_p2 = pnand %p268_p0, %p116_p1 }
   0x5   : > { %p136_p3 = scmp.lt.s32.totalorder (!%p117_p2), %s367_s10, 1  ;;  %p271_p4 = scmp.ne.s32.totalorder (!%p117_p2), %s367_s10, 0 }
   0x6   : > { %120 = sbr.rel (%p117_p2) target bundleno = 314 (0x13a), region = 28 }
   0xb   : > { %s137_s11 = scalar_select %p136_p3, %s367_s10, 1 }
   0xc   : > { %147 = sbr.rel (%p271_p4) target bundleno = 19 (0x13), region = 32 }
   0xd   : > { %s269_s12 = sshll.u32 %s137_s11, 3 }
   0xe   : > { %s139_s15 = scalar_lea.vmem %s389_s0, %s269_s12  ;;  %s143_s18 = scalar_lea.vmem %s390_s1, %s269_s12 }
  0x11   : > { %vm148_vm0 = vcmask 0   ;;  %v342_v0 = vmov 0.0  }
  0x12   : > { %149 = vst.msk [vmem:[#allocation2] sm:$0x1] %vm148_vm0, %v342_v0 }
  0x13 PF: > { %v150_v1 = vld [vmem:[%s139_s15] sm:$0xff]  ;;  %v343_v2 = vmov 0   ;;  %v152_v8 = vlaneseq  ;;  %s272_s19 = sshll.u32 %s367_s10, 3  ;;  %v344_v26 = vmov 0.0   ;;  %vm196_vm3 = vcmask 0   ;;  %p274_p5 = scmp.ne.s32.totalorder %s367_s10, 1 }
  0x14   : > { %160 = vmax.xlane.f32.xlu0 %v150_v1  ;;  %v151_v3 = vld [vmem:[%s143_s18] sm:$0xff]  ;;  %v155_v15 = vstv %s272_s19 }
  0x15   : > { %297 = vset.pattern.permute.xlu0 %v343_v2  ;;  %v170_v9 = vand.u32 127, %v152_v8  ;;  %v153_v13 = vshrl.u32 %v152_v8, 7 }
  0x17   : > { %v156_v18 = vadd.s32 %v155_v15, %v153_v13 }
  0x19   : > { %vm157_vm2 = vcmp.lt.s32.totalorder %v156_v18, 10  ;;  %v187_v35 = vld [vmem:[#allocation2] sm:$0x1] }
  0x1a   : > { %v273_v27 = vsel %vm157_vm2, 1.0, %v344_v26 }
  0x28   : > { %172 = vperm.xlu0 %297, %v151_v3  }
  0x87   : > { %v161_v4 = vpop.xlane.xlu0 %160 }
  0x88   : > { %v162_v5 = vsub.f32 %v150_v1, %v161_v4 }
  0x8a   : > { %179 = vadd.xlane.f32.xlu2 %v162_v5  ;;  %v163_v6 = vmul.f32 1.442695, %v162_v5 }
  0x8c   : > { %298 = vpow2.f32 %v163_v6 }
  0x92   : > { %v299_v7 = vpop.eup %298 }
  0x93   : > { %165 = vadd.xlane.f32.xlu1 %v299_v7 }
  0x9a   : > { %v173_v10 = vpop.permute.xlu0 %172 }
  0x9b   : > { %vm174_vm1 = vcmp.eq.s32.totalorder %v170_v9, %v173_v10 }
  0x9c   : > { %v175_v11 = vsel %vm174_vm1, %v162_v5, 0.0 }
  0x9d   : > { %176 = vadd.xlane.f32.xlu1 %v175_v11 }
  0xfd   : > { %v180_v20 = vpop.xlane.xlu2 %179 }
 0x106   : > { %v166_v12 = vpop.xlane.xlu1 %165 }
 0x107   : > { %300 = vlog2.f32 %v166_v12 }
 0x10d   : > { %v301_v14 = vpop.eup %300 }
 0x10e   : > { %v168_v16 = vmul.f32 0.6931472, %v301_v14 }
 0x110   : > { %v181_v17 = vmul.f32 128.0, %v168_v16  ;;  %v177_v19 = vpop.xlane.xlu1 %176 }
 0x111   : > { %v178_v21 = vsub.f32 %v177_v19, %v168_v16 }
 0x112   : > { %v182_v22 = vsub.f32 %v180_v20, %v181_v17 }
 0x113   : > { %v183_v23 = vmul.f32 0.9, %v178_v21 }
 0x114   : > { %v184_v24 = vmul.f32 0.00078125, %v182_v22 }
 0x116   : > { %v185_v25 = vadd.f32 %v184_v24, %v183_v23 }
 0x118   : > { %v186_v28 = vsub.f32 0.0, %v185_v25 }
 0x11a   : > { %v188_v29 = vmul.f32 %v273_v27, %v186_v28 }
 0x11c   : > { %v189_v30 = vrot.slane %v188_v29, 4 }
 0x11e   : > { %v190_v31 = vadd.f32 %v189_v30, %v188_v29 }
 0x120   : > { %v191_v32 = vrot.slane %v190_v31, 2 }
 0x122   : > { %v192_v33 = vadd.f32 %v191_v32, %v190_v31 }
 0x124   : > { %v193_v34 = vrot.slane %v192_v33, 1 }
 0x126   : > { %v194_v36 = vadd.f32 %v193_v34, %v192_v33  ;;  %201 = sbr.rel (%p274_p5) target bundleno = 309 (0x135), region = 36 }
 0x128   : > { %v195_v37 = vadd.f32 %v194_v36, %v187_v35 }
 0x12a   : > { %197 = vst.msk [vmem:[#allocation2] sm:$0x1] %vm196_vm3, %v195_v37 }
 0x131   : > { %v202_v38 = vld [vmem:[#allocation2] sm:$0x1] }
 0x132   : > { %v203_v39 = vmul.f32 0.1, %v202_v38 }
 0x134   : > { %204 = vst.msk [vmem:[#allocation3] sm:$0x1] %vm196_vm3, %v203_v39 }
 0x135 PF: > { %p283_p6 = scmp.eq.s32.totalorder %s367_s10, 1  ;;  %s345_s20 = smov [#allocation3]  }
 0x136   : > { %s211_s21 = sshll.u32 %s345_s20, 4  ;;  %s213_s24 = sshll.u32 %s391_s2, 4  ;;  %s212_s21 = int_to_ptr.vmem [resolvable:$true] %s211_s21  ;;  %s214_s24 = int_to_ptr.hbm [resolvable:$true] %s213_s24 }
 0x137   : > { %280 = dma.vmem_to_hbm [thread:$0]  (%p283_p6), %s212_s21, 16, %s214_s24, [#allocation4]  }
 0x138   : > { %335 = dma.done.wait (%p283_p6), [#allocation4], 16  }
 0x139   : > { %337 = vsyncadd (%p283_p6), [#allocation4], 4294967280 }
 0x13a PF: > { %s13_s9 = sadd.s32 1, %s340_s9  }
 0x13b   : > { %p10_p7 = scmp.ge.s32.totalorder %s13_s9, 4  }
 0x13d   :  { %12 = sbr.rel (!%p10_p7) target bundleno = 1 (0x1), region = 66 }
 0x142   :  { %227 = vsyncpa [#allocation4], 1 }
 0x143   :  { %229 = vsyncpa [#allocation4 + $0x1], 1 }

</bundles_post_ra>
